<compile_context>
chip_gen: v7x
topology: tpu7x:2x2x1
jax: 0.10.0
libtpu: 0.0.40
codegen_flags: <defaults>
</compile_context>

<pallas_src>
import math

import jax
import jax.numpy as jnp
from jax.experimental import pallas as pl
from jax.experimental.pallas import tpu as pltpu


def _round_up(x, m):
    return ((x + m - 1) // m) * m


def _cdiv(a, b):
    return (a + b - 1) // b


def _num_tensorcores_per_chip():
    # v7x exposes 2 TensorCores per chip; v5e/v6e have 1. Default to 1 (safe).
    try:
        kind = jax.devices()[0].device_kind.lower()
    except Exception:
        return 1
    return 2 if ("v7" in kind or "7x" in kind) else 1


def _sublane_multiple(*dtypes):
    # f32 packs (8,128) per vreg, bf16 (16,128), int8/fp8 (32,128).
    m = 8
    for dt in dtypes:
        item = max(1, jnp.dtype(dt).itemsize)
        m = max(m, 8 * max(1, 4 // item))
    return m


def _pick_fold(n, d, sub_mult):
    """Fold factor k: d % k == 0 (free reshape) and ideally (n*k) % sub_mult == 0."""
    k0 = sub_mult // math.gcd(n, sub_mult)
    if d % k0 == 0:
        return k0
    # Densest fold that still divides d (keeps the reshape free, no padding).
    return max(1, math.gcd(d, k0))


def _make_kernel(td, n_chunks, c_chunks, tail_valid, has_dup):
    """Per-row partial sums of p*t and p+t, accumulated lane-densely to (tr, 128)."""
    n128 = td // 128
    ragged = tail_valid != td
    n_full = n_chunks - 1 if ragged else n_chunks

    def _fold128(x):
        # Sum groups of 128 lanes -> (rows, 128). Static 128-aligned slices
        # (no relayout), tree-reduced to keep the VPU dependency chain short.
        parts = [x[:, j * 128:(j + 1) * 128] for j in range(n128)]
        while len(parts) > 1:
            nxt = [a + b for a, b in zip(parts[0::2], parts[1::2])]
            if len(parts) % 2:
                nxt.append(parts[-1])
            parts = nxt
        return parts[0]

    def kernel(p_ref, t_ref, num_ref, den_ref):
        g = pl.program_id(0)       # chunk-group (v7x TensorCore split)
        c = pl.program_id(2)       # chunk within group ("arbitrary" reduction axis)
        chunk = g * c_chunks + c   # global chunk index

        @pl.when(c == 0)
        def _init():
            num_ref[...] = jnp.zeros_like(num_ref)
            den_ref[...] = jnp.zeros_like(den_ref)

        p = p_ref[...].astype(jnp.float32)
        t = t_ref[...].astype(jnp.float32)
        # TODO(synk): optional v7x micro-opt — keep bf16 inputs in bf16 for the
        # elementwise mul/add and widen only the 128-lane partials (needs an
        # accuracy check before committing), per perf review.

        def accumulate(pv, tv):
            num_ref[...] += _fold128(pv * tv)
            den_ref[...] += _fold128(pv + tv)

        if ragged or has_dup:
            @pl.when(chunk < n_full)
            def _interior():
                accumulate(p, t)

            if ragged:
                @pl.when(chunk == n_chunks - 1)
                def _tail():
                    col = jax.lax.broadcasted_iota(jnp.int32, p.shape, 1)
                    m = col < tail_valid
                    accumulate(jnp.where(m, p, 0.0), jnp.where(m, t, 0.0))
            # chunk >= n_chunks (duplicate slot from the even split) -> no-op.
        else:
            accumulate(p, t)

    return kernel


def binary_dice_loss(predict, target, smooth=1.0, p=2, reduction="mean"):
    del p, reduction  # stored but unused by the reference forward
    assert predict.shape[0] == target.shape[0], "predict & target batch size don't match"
    n = predict.shape[0]
    p2 = predict.reshape(n, -1)
    t2 = target.reshape(n, -1)
    assert p2.shape == t2.shape, "predict & target element counts don't match"
    d = p2.shape[1]

    p_item = jnp.dtype(p2.dtype).itemsize
    t_item = jnp.dtype(t2.dtype).itemsize
    per_elem = p_item + t_item

    # ---- sublane fold: (n, d) -> (r, dr), k | d so this is a free reshape.
    sub_mult = _sublane_multiple(p2.dtype, t2.dtype)
    k = _pick_fold(n, d, sub_mult)
    r = n * k
    dr = d // k
    p2r = p2.reshape(r, dr)
    t2r = t2.reshape(r, dr)

    # ---- row tile (multiple of 8): bounds VMEM for any batch size and adds a
    # second "parallel" grid axis.
    ROW_CAP = 1024
    tr = r if r <= ROW_CAP else ROW_CAP
    row_blocks = _cdiv(r, tr)
    r_pad = row_blocks * tr

    # ---- lane tile: chunk count first, then the smallest covering 128-multiple.
    # Working set = 2 pipeline buffers x (p tile + t tile) <= ~16 MiB; with
    # tr <= 1024 the td >= 128 floor can never exceed this budget.
    working_set_budget = 16 * 1024 * 1024
    td_budget = max(128, (working_set_budget // (2 * tr * per_elem)) // 128 * 128)
    td_max = min(td_budget, _round_up(dr, 128))
    n_chunks = _cdiv(dr, td_max)
    td = min(td_max, _round_up(_cdiv(dr, n_chunks), 128))
    n_chunks = _cdiv(dr, td)                 # recompute: tail chunk never empty
    tail_valid = dr - (n_chunks - 1) * td    # valid lanes in the last chunk

    # ---- v7x: split the chunk loop into 2 parallel groups whenever possible
    # so both TensorCores get work. Odd chunk counts are handled by a clamped
    # duplicate slot that is skipped in-kernel. Single-TC chips keep 1 group.
    g_groups = 2 if (_num_tensorcores_per_chip() == 2 and n_chunks >= 2) else 1
    c_chunks = _cdiv(n_chunks, g_groups)
    has_dup = g_groups * c_chunks > n_chunks

    if has_dup:
        def in_map(g, ri, c):
            return (ri, jnp.minimum(g * c_chunks + c, n_chunks - 1))
    else:
        def in_map(g, ri, c):
            return (ri, g * c_chunks + c)

    def out_map(g, ri, c):
        return (g, ri, 0)

    kernel = _make_kernel(td, n_chunks, c_chunks, tail_valid, has_dup)

    out_bytes = 2 * g_groups * r_pad * 128 * 4
    cost = pl.CostEstimate(
        flops=3 * n * d,
        transcendentals=0,
        bytes_accessed=n * d * per_elem + out_bytes,
    )

    num_out, den_out = pl.pallas_call(
        kernel,
        out_shape=(
            jax.ShapeDtypeStruct((g_groups, r_pad, 128), jnp.float32),
            jax.ShapeDtypeStruct((g_groups, r_pad, 128), jnp.float32),
        ),
        grid_spec=pltpu.PrefetchScalarGridSpec(
            num_scalar_prefetch=0,
            grid=(g_groups, row_blocks, c_chunks),
            in_specs=[
                pl.BlockSpec((tr, td), in_map),
                pl.BlockSpec((tr, td), in_map),
            ],
            out_specs=[
                pl.BlockSpec((None, tr, 128), out_map),
                pl.BlockSpec((None, tr, 128), out_map),
            ],
        ),
        compiler_params=pltpu.CompilerParams(
            dimension_semantics=("parallel", "parallel", "arbitrary"),
            vmem_limit_bytes=32 * 1024 * 1024,
        ),
        cost_estimate=cost,
    )(p2r, t2r)

    # ---- tiny O(N) epilogue in plain JAX: fold lanes/groups/sub-rows, dice, mask.
    num_rows = jnp.sum(num_out, axis=(0, 2))[:r]          # (r,)
    den_rows = jnp.sum(den_out, axis=(0, 2))[:r]          # (r,)
    num = num_rows.reshape(n, k).sum(axis=1)              # per original batch row
    den = den_rows.reshape(n, k).sum(axis=1) + smooth
    dice_loss = 1.0 - 2.0 * num / den
    valid = (t2[:, 0].astype(jnp.float32) != -1.0).astype(jnp.float32)
    # 0/0 -> NaN when no valid rows, matching the PyTorch behavior.
    return jnp.sum(dice_loss * valid) / jnp.sum(valid)


def _reference(predict, target, smooth=1.0):
    n = predict.shape[0]
    p2 = predict.reshape(n, -1).astype(jnp.float32)
    t2 = target.reshape(n, -1).astype(jnp.float32)
    num = jnp.sum(p2 * t2, axis=1)
    den = jnp.sum(p2, axis=1) + jnp.sum(t2, axis=1) + smooth
    dice_loss = 1.0 - 2.0 * num / den
    valid = (t2[:, 0] != -1.0).astype(jnp.float32)
    return jnp.sum(dice_loss * valid) / jnp.sum(valid)


if __name__ == "__main__":
    key = jax.random.PRNGKey(0)
    k1, k2 = jax.random.split(key)
    N, C, H, W = 2, 4, 16, 16  # NCHW, flattened to (N, C*H*W)

    predict = jax.nn.sigmoid(jax.random.normal(k1, (N, C, H, W), jnp.float32))
    target = (jax.random.uniform(k2, (N, C, H, W)) > 0.5).astype(jnp.float32)

    loss = binary_dice_loss(predict, target, smooth=1.0)
    loss = jax.block_until_ready(loss)

    ref = _reference(predict, target, smooth=1.0)
    assert jnp.allclose(loss, ref, atol=1e-5, rtol=1e-5), (loss, ref)
    print("KERNEL_OK")
</pallas_src>

<mosaic_0001>
module attributes {stable_mosaic.version = 11 : i64} {
  func.func @kernel(%arg0: i32, %arg1: i32, %arg2: i32, %arg3: memref<8x256xf32, #tpu.memory_space<vmem>>, %arg4: memref<8x256xf32, #tpu.memory_space<vmem>>, %arg5: memref<1x8x128xf32, #tpu.memory_space<vmem>>, %arg6: memref<1x8x128xf32, #tpu.memory_space<vmem>>) attributes {dimension_semantics = [#tpu.dimension_semantics<parallel>, #tpu.dimension_semantics<parallel>, #tpu.dimension_semantics<arbitrary>], iteration_bounds = array<i64: 1, 1, 1>, scalar_prefetch = 0 : i64, scratch_operands = 0 : i64, tpu.core_type = #tpu.core_type<tc>, window_params = [{transform_indices = @transform_0, window_bounds = array<i64: 8, 256>}, {transform_indices = @transform_1, window_bounds = array<i64: 8, 256>}, {transform_indices = @transform_2, window_bounds = array<i64: 1, 8, 128>}, {transform_indices = @transform_3, window_bounds = array<i64: 1, 8, 128>}]} {
    %c0_i32 = arith.constant 0 : i32
    %0 = arith.cmpi eq, %arg2, %c0_i32 : i32
    %1 = arith.extui %0 : i1 to i32
    %c0_i32_0 = arith.constant 0 : i32
    %2 = arith.cmpi ne, %1, %c0_i32_0 : i32
    scf.if %2 {
      %cst = arith.constant 0.000000e+00 : f32
      %25 = vector.broadcast %cst : f32 to vector<8x128xf32>
      %c0_16 = arith.constant 0 : index
      %c0_17 = arith.constant 0 : index
      %c0_18 = arith.constant 0 : index
      %26 = vector.load %arg5[%c0_16, %c0_17, %c0_18] : memref<1x8x128xf32, #tpu.memory_space<vmem>>, vector<1x8x128xf32>
      %27 = vector.shape_cast %26 : vector<1x8x128xf32> to vector<8x128xf32>
      %28 = vector.shape_cast %25 : vector<8x128xf32> to vector<1x8x128xf32>
      tpu.vector_store %arg5[%c0_16, %c0_17, %c0_18], %28 {strides = array<i32>} : memref<1x8x128xf32, #tpu.memory_space<vmem>>, vector<1x8x128xf32>,
      %cst_19 = arith.constant 0.000000e+00 : f32
      %29 = vector.broadcast %cst_19 : f32 to vector<8x128xf32>
      %c0_20 = arith.constant 0 : index
      %c0_21 = arith.constant 0 : index
      %c0_22 = arith.constant 0 : index
      %30 = vector.load %arg6[%c0_20, %c0_21, %c0_22] : memref<1x8x128xf32, #tpu.memory_space<vmem>>, vector<1x8x128xf32>
      %31 = vector.shape_cast %30 : vector<1x8x128xf32> to vector<8x128xf32>
      %32 = vector.shape_cast %29 : vector<8x128xf32> to vector<1x8x128xf32>
      tpu.vector_store %arg6[%c0_20, %c0_21, %c0_22], %32 {strides = array<i32>} : memref<1x8x128xf32, #tpu.memory_space<vmem>>, vector<1x8x128xf32>,
    } else {
    }
    %c0 = arith.constant 0 : index
    %c0_1 = arith.constant 0 : index
    %3 = vector.load %arg3[%c0, %c0_1] : memref<8x256xf32, #tpu.memory_space<vmem>>, vector<8x256xf32>
    %c0_2 = arith.constant 0 : index
    %c0_3 = arith.constant 0 : index
    %4 = vector.load %arg4[%c0_2, %c0_3] : memref<8x256xf32, #tpu.memory_space<vmem>>, vector<8x256xf32>
    %c0_4 = arith.constant 0 : index
    %c0_5 = arith.constant 0 : index
    %c0_6 = arith.constant 0 : index
    %5 = vector.load %arg5[%c0_4, %c0_5, %c0_6] : memref<1x8x128xf32, #tpu.memory_space<vmem>>, vector<1x8x128xf32>
    %6 = vector.shape_cast %5 : vector<1x8x128xf32> to vector<8x128xf32>
    %7 = arith.mulf %3, %4 : vector<8x256xf32>
    %8 = vector.extract_strided_slice %7 {offsets = [0, 0], sizes = [8, 128], strides = [1, 1]} : vector<8x256xf32> to vector<8x128xf32>
    %9 = vector.extract_strided_slice %7 {offsets = [0, 128], sizes = [8, 128], strides = [1, 1]} : vector<8x256xf32> to vector<8x128xf32>
    %10 = arith.addf %8, %9 : vector<8x128xf32>
    %11 = arith.addf %6, %10 : vector<8x128xf32>
    %c0_7 = arith.constant 0 : index
    %c0_8 = arith.constant 0 : index
    %c0_9 = arith.constant 0 : index
    %12 = vector.load %arg5[%c0_7, %c0_8, %c0_9] : memref<1x8x128xf32, #tpu.memory_space<vmem>>, vector<1x8x128xf32>
    %13 = vector.shape_cast %12 : vector<1x8x128xf32> to vector<8x128xf32>
    %14 = vector.shape_cast %11 : vector<8x128xf32> to vector<1x8x128xf32>
    tpu.vector_store %arg5[%c0_7, %c0_8, %c0_9], %14 {strides = array<i32>} : memref<1x8x128xf32, #tpu.memory_space<vmem>>, vector<1x8x128xf32>,
    %c0_10 = arith.constant 0 : index
    %c0_11 = arith.constant 0 : index
    %c0_12 = arith.constant 0 : index
    %15 = vector.load %arg6[%c0_10, %c0_11, %c0_12] : memref<1x8x128xf32, #tpu.memory_space<vmem>>, vector<1x8x128xf32>
    %16 = vector.shape_cast %15 : vector<1x8x128xf32> to vector<8x128xf32>
    %17 = arith.addf %3, %4 : vector<8x256xf32>
    %18 = vector.extract_strided_slice %17 {offsets = [0, 0], sizes = [8, 128], strides = [1, 1]} : vector<8x256xf32> to vector<8x128xf32>
    %19 = vector.extract_strided_slice %17 {offsets = [0, 128], sizes = [8, 128], strides = [1, 1]} : vector<8x256xf32> to vector<8x128xf32>
    %20 = arith.addf %18, %19 : vector<8x128xf32>
    %21 = arith.addf %16, %20 : vector<8x128xf32>
    %c0_13 = arith.constant 0 : index
    %c0_14 = arith.constant 0 : index
    %c0_15 = arith.constant 0 : index
    %22 = vector.load %arg6[%c0_13, %c0_14, %c0_15] : memref<1x8x128xf32, #tpu.memory_space<vmem>>, vector<1x8x128xf32>
    %23 = vector.shape_cast %22 : vector<1x8x128xf32> to vector<8x128xf32>
    %24 = vector.shape_cast %21 : vector<8x128xf32> to vector<1x8x128xf32>
    tpu.vector_store %arg6[%c0_13, %c0_14, %c0_15], %24 {strides = array<i32>} : memref<1x8x128xf32, #tpu.memory_space<vmem>>, vector<1x8x128xf32>,
    return
  }
  func.func @transform_0(%arg0: i32, %arg1: i32, %arg2: i32) -> (i32, i32) {
    %c1_i32 = arith.constant 1 : i32
    %0 = arith.muli %arg0, %c1_i32 : i32
    %1 = arith.addi %0, %arg2 : i32
    %c0_i32 = arith.constant 0 : i32
    return %arg1, %1 : i32, i32
  }
  func.func @transform_1(%arg0: i32, %arg1: i32, %arg2: i32) -> (i32, i32) {
    %c1_i32 = arith.constant 1 : i32
    %0 = arith.muli %arg0, %c1_i32 : i32
    %1 = arith.addi %0, %arg2 : i32
    %c0_i32 = arith.constant 0 : i32
    return %arg1, %1 : i32, i32
  }
  func.func @transform_2(%arg0: i32, %arg1: i32, %arg2: i32) -> (i32, i32, i32) {
    %c0_i32 = arith.constant 0 : i32
    %c0_i32_0 = arith.constant 0 : i32
    return %arg0, %arg1, %c0_i32 : i32, i32, i32
  }
  func.func @transform_3(%arg0: i32, %arg1: i32, %arg2: i32) -> (i32, i32, i32) {
    %c0_i32 = arith.constant 0 : i32
    %c0_i32_0 = arith.constant 0 : i32
    return %arg0, %arg1, %c0_i32 : i32, i32, i32
  }
}

</mosaic_0001>

<bundles_post_ra>
// kernel: tpu_custom_call.1
= control target key start
LH: loop header
LB: loop body
LE: loop exit
PB: predicated region body
PF: predicated region fallthrough
CT: control target
= control target key end

     0   :  { %9 = vsyncpa [#allocation3], 0  ;;  %s276_s0 = inlined_call_operand.hbm [shape: f32[8,256], index: 0, kind: input, shape index: {}]   ;;  %s277_s1 = inlined_call_operand.hbm [shape: f32[8,256], index: 1, kind: input, shape index: {}]   ;;  %s278_s2 = inlined_call_operand.hbm [shape: f32[1,8,128], index: 2, kind: output, shape index: {0}]   ;;  %s279_s3 = inlined_call_operand.hbm [shape: f32[1,8,128], index: 3, kind: output, shape index: {1}]  }
   0x1   :  { %10 = vsyncpa [#allocation6], 0 }
   0x2   :  { %11 = vsyncpa [#allocation4], 0 }
   0x3   :  { %12 = vsyncpa [#allocation9], 0  ;;  %s204_s12 = smov [#allocation2]   ;;  %s205_s14 = smov [#allocation5]  }
   0x4   :  { %s23_s13 = sshll.u32 %s204_s12, 4  ;;  %s37_s15 = sshll.u32 %s205_s14, 4  ;;  %s24_s13 = int_to_ptr.vmem [resolvable:$true] %s23_s13  ;;  %s38_s15 = int_to_ptr.vmem [resolvable:$true] %s37_s15 }
   0x5   :  { %s108_s18 = scalar_lea.hbm %s276_s0, 256 }
   0x6   :  { %p109_p0 = scmp.ne.s32.totalorder %s276_s0, %s108_s18  ;;  %p112_p1 = scmp.lt.u32.totalorder %s108_s18, %s276_s0 }
   0x8   :  { %p114_p2 = pnand %p112_p1, %p109_p0 }
   0xa   :  { %117 = shalt.err (!%p114_p2)
}
   0xb   :  { %s118_s23 = scalar_lea.vmem %s24_s13, 256  ;;  %p123_p4 = scmp.lt.s32.totalorder %s24_s13, %s24_s13 }
   0xc   :  { %p119_p3 = scmp.ne.s32.totalorder %s24_s13, %s118_s23  ;;  %p124_p5 = scmp.lt.s32.totalorder %s118_s23, %s118_s23 }
   0xe   :  { %p125_p6 = por %p124_p5, %p123_p4 }
  0x10   :  { %p126_p7 = pnand %p125_p6, %p119_p3 }
  0x12   :  { %129 = shalt.err (!%p126_p7)
}
  0x13   :  { %26 = dma.hbm_to_vmem [thread:$0]  %s276_s0, 256, %s24_s13, [#allocation3]  }
  0x14   :  { %s130_s28 = scalar_lea.hbm %s277_s1, 256 }
  0x15   :  { %p131_p8 = scmp.ne.s32.totalorder %s277_s1, %s130_s28  ;;  %p134_p9 = scmp.lt.u32.totalorder %s130_s28, %s277_s1 }
  0x17   :  { %p136_p10 = pnand %p134_p9, %p131_p8 }
  0x19   :  { %139 = shalt.err (!%p136_p10)
}
  0x1a   :  { %s140_s6 = scalar_lea.vmem %s38_s15, 256  ;;  %p145_p12 = scmp.lt.s32.totalorder %s38_s15, %s38_s15 }
  0x1b   :  { %p141_p11 = scmp.ne.s32.totalorder %s38_s15, %s140_s6  ;;  %p146_p13 = scmp.lt.s32.totalorder %s140_s6, %s140_s6 }
  0x1d   :  { %p147_p0 = por %p146_p13, %p145_p12 }
  0x1f   :  { %p148_p1 = pnand %p147_p0, %p141_p11 }
  0x21   :  { %151 = shalt.err (!%p148_p1)
}
  0x22   :  { %40 = dma.hbm_to_vmem [thread:$0]  %s277_s1, 256, %s38_s15, [#allocation6]  }
  0x23   :  { %196 = dma.done.wait [#allocation3], 256  }
  0x24   :  { %197 = vsyncadd [#allocation3], 4294967040 }
  0x25   :  { %198 = dma.done.wait [#allocation6], 256  }
  0x26   :  { %199 = vsyncadd [#allocation6], 4294967040  ;;  %v57_v0 = vld [vmem:[#allocation2] sm:$0xff]  ;;  %v58_v1 = vld [vmem:[#allocation2 + $0x8] sm:$0xff]  ;;  %s206_s8 = smov [#allocation7]   ;;  %s207_s10 = smov [#allocation8]  }
  0x27   :  { %v59_v2 = vld [vmem:[#allocation5] sm:$0xff]  ;;  %v60_v3 = vld [vmem:[#allocation5 + $0x8] sm:$0xff]  ;;  %s79_s9 = sshll.u32 %s206_s8, 4  ;;  %s89_s11 = sshll.u32 %s207_s10, 4  ;;  %s80_s9 = int_to_ptr.vmem [resolvable:$true] %s79_s9  ;;  %s90_s11 = int_to_ptr.vmem [resolvable:$true] %s89_s11 }
  0x28   :  { %v62_v4 = vmul.f32 %v59_v2, %v57_v0  ;;  %v68_v5 = vadd.f32 %v59_v2, %v57_v0  ;;  %v63_v6 = vmul.f32 %v60_v3, %v58_v1  ;;  %v69_v7 = vadd.f32 %v60_v3, %v58_v1  ;;  %s152_s1 = scalar_lea.vmem %s80_s9, 128  ;;  %p157_p3 = scmp.lt.s32.totalorder %s80_s9, %s80_s9 }
  0x29   :  { %p153_p2 = scmp.ne.s32.totalorder %s80_s9, %s152_s1  ;;  %p158_p4 = scmp.lt.s32.totalorder %s152_s1, %s152_s1 }
  0x2a   :  { %v64_v8 = vadd.f32 %v63_v6, %v62_v4  ;;  %v70_v9 = vadd.f32 %v69_v7, %v68_v5 }
  0x2b   :  { %p159_p5 = por %p158_p4, %p157_p3 }
  0x2c   :  { %66 = vst [vmem:[#allocation7] sm:$0xff] %v64_v8  ;;  %72 = vst [vmem:[#allocation8] sm:$0xff] %v70_v9 }
  0x2d   :  { %p160_p6 = pnand %p159_p5, %p153_p2 }
  0x2f   :  { %163 = shalt.err (!%p160_p6)
}
  0x30   :  { %s164_s14 = scalar_lea.hbm %s278_s2, 128 }
  0x31   :  { %p165_p7 = scmp.ne.s32.totalorder %s278_s2, %s164_s14  ;;  %p168_p8 = scmp.lt.u32.totalorder %s164_s14, %s278_s2 }
  0x33   :  { %p170_p9 = pnand %p168_p8, %p165_p7 }
  0x35   :  { %173 = shalt.err (!%p170_p9)
}
  0x36   :  { %82 = dma.vmem_to_hbm [thread:$0]  %s80_s9, 128, %s278_s2, [#allocation4]  }
  0x37   :  { %s174_s21 = scalar_lea.vmem %s90_s11, 128  ;;  %p179_p11 = scmp.lt.s32.totalorder %s90_s11, %s90_s11 }
  0x38   :  { %p175_p10 = scmp.ne.s32.totalorder %s90_s11, %s174_s21  ;;  %p180_p12 = scmp.lt.s32.totalorder %s174_s21, %s174_s21 }
  0x3a   :  { %p181_p13 = por %p180_p12, %p179_p11 }
  0x3c   :  { %p182_p0 = pnand %p181_p13, %p175_p10 }
  0x3e   :  { %185 = shalt.err (!%p182_p0)
}
  0x3f   :  { %s186_s24 = scalar_lea.hbm %s279_s3, 128 }
  0x40   :  { %p187_p1 = scmp.ne.s32.totalorder %s279_s3, %s186_s24  ;;  %p190_p2 = scmp.lt.u32.totalorder %s186_s24, %s279_s3 }
  0x42   :  { %p192_p3 = pnand %p190_p2, %p187_p1 }
  0x44   :  { %195 = shalt.err (!%p192_p3)
}
  0x45   :  { %92 = dma.vmem_to_hbm [thread:$0]  %s90_s11, 128, %s279_s3, [#allocation9]  }
  0x46   :  { %200 = dma.done.wait [#allocation4], 128  }
  0x47   :  { %201 = vsyncadd [#allocation4], 4294967168 }
  0x48   :  { %202 = dma.done.wait [#allocation9], 128  }
  0x49   :  { %203 = vsyncadd [#allocation9], 4294967168 }
  0x4a   :  { %99 = vsyncpa [#allocation3], 1 }
  0x4b   :  { %100 = vsyncpa [#allocation6], 1 }
  0x4c   :  { %101 = vsyncpa [#allocation4], 1 }
  0x4d   :  { %102 = vsyncpa [#allocation9], 1 }

</bundles_post_ra>
